<compile_context>
chip_gen: v5e
topology: v5e:2x2
jax: 0.10.0
libtpu: 0.0.40
codegen_flags: <defaults>
</compile_context>

<pallas_src>
import jax
import jax.numpy as jnp
from jax.experimental import pallas as pl
from jax.experimental.pallas import tpu as pltpu

HIDDEN = 128
LANE = 128
SUBLANE_BF16 = 16  # bf16 packs 16 rows per vreg sublane group; keep tiles aligned.


def _round_up(x, m):
    return (x + m - 1) // m * m


def dqn_kernel(x_ref, w1_ref, b1_ref, w2_ref, b2_ref, w3_ref, b3_ref, o_ref):
    # fc1 + relu (bf16 x bf16 -> f32 accumulate, f32 bias, back to bf16 for next MXU op)
    h1 = jnp.dot(x_ref[...], w1_ref[...], preferred_element_type=jnp.float32)
    h1 = jnp.maximum(h1 + b1_ref[...], 0.0).astype(jnp.bfloat16)
    # fc2 + relu
    h2 = jnp.dot(h1, w2_ref[...], preferred_element_type=jnp.float32)
    h2 = jnp.maximum(h2 + b2_ref[...], 0.0).astype(jnp.bfloat16)
    # fc3 (no activation); padded output columns are exactly zero (zero w3/b3 columns)
    out = jnp.dot(h2, w3_ref[...], preferred_element_type=jnp.float32)
    o_ref[...] = (out + b3_ref[...]).astype(o_ref.dtype)


def prepare_params(params, *, compute_dtype=jnp.bfloat16):
    """One-time prep (per parameter update, NOT per forward call):
    transpose PyTorch-layout (out,in) weights to (in,out), cast matmul operands to
    bf16, pad fc3's output dim to a lane-dense 128 with zero columns, and reshape
    biases to (1, N) f32."""
    action_size = params["fc3_w"].shape[0]
    out_pad = _round_up(action_size, LANE)

    w1 = params["fc1_w"].T.astype(compute_dtype)                      # (state, 128)
    w2 = params["fc2_w"].T.astype(compute_dtype)                      # (128, 128)
    w3 = jnp.pad(params["fc3_w"].T.astype(jnp.float32),
                 ((0, 0), (0, out_pad - action_size))).astype(compute_dtype)  # (128, 128)
    b1 = params["fc1_b"].astype(jnp.float32)[None, :]                  # (1, 128)
    b2 = params["fc2_b"].astype(jnp.float32)[None, :]                  # (1, 128)
    b3 = jnp.pad(params["fc3_b"].astype(jnp.float32),
                 (0, out_pad - action_size))[None, :]                  # (1, 128)
    return dict(w1=w1, b1=b1, w2=w2, b2=b2, w3=w3, b3=b3,
                action_size=action_size, out_pad=out_pad,
                compute_dtype=compute_dtype)


def dqn_forward(x, prepped, *, block_b=2048, out_dtype=jnp.bfloat16,
                trim=True, use_core_parallel=False):
    """x: (B, state_size). prepped: output of prepare_params().

    trim=True returns (B, action_size) (module semantics).  trim=False returns the
    padded (B, 128) slab (extra columns are exactly zero) and skips the extra
    HBM read+write pass of the slice -- preferred inside a training pipeline.
    use_core_parallel=True switches the batch axis to CORE_PARALLEL (v7x, 2 TCs)."""
    w1, b1 = prepped["w1"], prepped["b1"]
    w2, b2 = prepped["w2"], prepped["b2"]
    w3, b3 = prepped["w3"], prepped["b3"]
    action_size = prepped["action_size"]
    out_pad = prepped["out_pad"]

    B, state_size = x.shape
    x = x.astype(prepped["compute_dtype"])   # bf16: half the x DMA bytes

    # Sublane-aligned batch tile; Pallas masks the ragged last tile (no jnp.pad of x,
    # no post-call batch slice).
    block_b = _round_up(max(int(block_b), SUBLANE_BF16), SUBLANE_BF16)
    tb = min(block_b, _round_up(B, SUBLANE_BF16))
    grid = (pl.cdiv(B, tb),)

    itemsize = lambda a: jnp.dtype(a.dtype).itemsize
    flops = 2 * B * (state_size * HIDDEN + HIDDEN * HIDDEN + HIDDEN * out_pad)
    bytes_accessed = (B * state_size * itemsize(x)
                      + w1.size * itemsize(w1) + w2.size * itemsize(w2)
                      + w3.size * itemsize(w3)
                      + 4 * (b1.size + b2.size + b3.size)
                      + B * out_pad * jnp.dtype(out_dtype).itemsize)

    resident = lambda i: (0, 0)   # weights/biases: same block every step -> VMEM-resident
    semantics = pltpu.CORE_PARALLEL if use_core_parallel else "parallel"

    out = pl.pallas_call(
        dqn_kernel,
        out_shape=jax.ShapeDtypeStruct((B, out_pad), out_dtype),
        grid_spec=pltpu.PrefetchScalarGridSpec(
            num_scalar_prefetch=0,
            grid=grid,
            in_specs=[
                pl.BlockSpec((tb, state_size), lambda i: (i, 0)),  # x: tiled over batch
                pl.BlockSpec(w1.shape, resident),
                pl.BlockSpec(b1.shape, resident),
                pl.BlockSpec(w2.shape, resident),
                pl.BlockSpec(b2.shape, resident),
                pl.BlockSpec(w3.shape, resident),
                pl.BlockSpec(b3.shape, resident),
            ],
            out_specs=pl.BlockSpec((tb, out_pad), lambda i: (i, 0)),
        ),
        compiler_params=pltpu.CompilerParams(
            dimension_semantics=(semantics,),
        ),
        cost_estimate=pl.CostEstimate(
            flops=flops, transcendentals=0, bytes_accessed=bytes_accessed),
    )(x, w1, b1, w2, b2, w3, b3)

    if trim:
        return out[:, :action_size]
    return out


def init_params(key, state_size, action_size):
    """Deterministic init matching nn.Linear shapes: weight (out,in), bias (out,)."""
    ks = jax.random.split(key, 6)

    def linear_init(kw, kb, fan_in, fan_out):
        bound = 1.0 / jnp.sqrt(fan_in)
        w = jax.random.uniform(kw, (fan_out, fan_in), jnp.float32, -bound, bound)
        b = jax.random.uniform(kb, (fan_out,), jnp.float32, -bound, bound)
        return w, b

    fc1_w, fc1_b = linear_init(ks[0], ks[1], state_size, 128)
    fc2_w, fc2_b = linear_init(ks[2], ks[3], 128, 128)
    fc3_w, fc3_b = linear_init(ks[4], ks[5], 128, action_size)
    return dict(fc1_w=fc1_w, fc1_b=fc1_b,
                fc2_w=fc2_w, fc2_b=fc2_b,
                fc3_w=fc3_w, fc3_b=fc3_b)


def _reference(x, params):
    h = jnp.maximum(x @ params["fc1_w"].T + params["fc1_b"], 0.0)
    h = jnp.maximum(h @ params["fc2_w"].T + params["fc2_b"], 0.0)
    return h @ params["fc3_w"].T + params["fc3_b"]


if __name__ == "__main__":
    state_size = 8
    action_size = 4

    key = jax.random.PRNGKey(0)
    k_params, k_x1, k_x2 = jax.random.split(key, 3)
    params = init_params(k_params, state_size, action_size)
    prepped = prepare_params(params)   # one-time: transpose + bf16 cast + pad + bias reshape

    # bf16 matmul inputs + bf16 output vs f32 reference -> loose-but-meaningful tolerance.
    TOL = 5e-2

    # Small "acting" batch (single ragged tile).
    x_small = jax.random.normal(k_x1, (2, state_size), jnp.float32)
    out_small = jax.block_until_ready(dqn_forward(x_small, prepped))
    ref_small = _reference(x_small, params)
    assert out_small.shape == (2, action_size)
    assert jnp.allclose(out_small.astype(jnp.float32), ref_small, atol=TOL, rtol=TOL)

    # Larger batch exercising multiple grid steps + a ragged last tile (1000 = 3*256 + 232).
    x_big = jax.random.normal(k_x2, (1000, state_size), jnp.float32)
    out_big = jax.block_until_ready(dqn_forward(x_big, prepped, block_b=256))
    ref_big = _reference(x_big, params)
    assert out_big.shape == (1000, action_size)
    assert jnp.allclose(out_big.astype(jnp.float32), ref_big, atol=TOL, rtol=TOL)

    # Padded (untrimmed) fast path: extra columns must be exactly zero.
    out_pad = jax.block_until_ready(dqn_forward(x_big, prepped, block_b=256, trim=False))
    assert out_pad.shape == (1000, prepped["out_pad"])
    assert jnp.all(out_pad[:, action_size:] == 0)

    print("KERNEL_OK")
</pallas_src>

<mosaic_0001>
module attributes {stable_mosaic.version = 11 : i64} {
  func.func @dqn_kernel(%arg0: i32, %arg1: memref<16x8xbf16, #tpu.memory_space<vmem>>, %arg2: memref<8x128xbf16, #tpu.memory_space<vmem>>, %arg3: memref<1x128xf32, #tpu.memory_space<vmem>>, %arg4: memref<128x128xbf16, #tpu.memory_space<vmem>>, %arg5: memref<1x128xf32, #tpu.memory_space<vmem>>, %arg6: memref<128x128xbf16, #tpu.memory_space<vmem>>, %arg7: memref<1x128xf32, #tpu.memory_space<vmem>>, %arg8: memref<16x128xbf16, #tpu.memory_space<vmem>>) attributes {dimension_semantics = [#tpu.dimension_semantics<parallel>], iteration_bounds = array<i64: 1>, scalar_prefetch = 0 : i64, scratch_operands = 0 : i64, tpu.core_type = #tpu.core_type<tc>, window_params = [{transform_indices = @transform_0, window_bounds = array<i64: 16, 8>}, {pipeline_mode = #tpu.pipeline_mode<synchronous>, transform_indices = @transform_1, window_bounds = array<i64: 8, 128>}, {pipeline_mode = #tpu.pipeline_mode<synchronous>, transform_indices = @transform_2, window_bounds = array<i64: 1, 128>}, {pipeline_mode = #tpu.pipeline_mode<synchronous>, transform_indices = @transform_3, window_bounds = array<i64: 128, 128>}, {pipeline_mode = #tpu.pipeline_mode<synchronous>, transform_indices = @transform_4, window_bounds = array<i64: 1, 128>}, {pipeline_mode = #tpu.pipeline_mode<synchronous>, transform_indices = @transform_5, window_bounds = array<i64: 128, 128>}, {pipeline_mode = #tpu.pipeline_mode<synchronous>, transform_indices = @transform_6, window_bounds = array<i64: 1, 128>}, {transform_indices = @transform_7, window_bounds = array<i64: 16, 128>}]} {
    %c0 = arith.constant 0 : index
    %c0_0 = arith.constant 0 : index
    %0 = vector.load %arg1[%c0, %c0_0] : memref<16x8xbf16, #tpu.memory_space<vmem>>, vector<16x8xbf16>
    %c0_1 = arith.constant 0 : index
    %c0_2 = arith.constant 0 : index
    %1 = vector.load %arg2[%c0_1, %c0_2] : memref<8x128xbf16, #tpu.memory_space<vmem>>, vector<8x128xbf16>
    %cst = arith.constant dense<0.000000e+00> : vector<16x128xf32>
    %2 = tpu.matmul %0, %1, %cst {dimension_numbers = #tpu.dot_dimension_numbers<[1], [0], [0], [1], [0, 0, 1, 1], [], []>} : vector<16x8xbf16>, vector<8x128xbf16>, vector<16x128xf32> -> vector<16x128xf32>
    %c0_3 = arith.constant 0 : index
    %c0_4 = arith.constant 0 : index
    %3 = vector.load %arg3[%c0_3, %c0_4] : memref<1x128xf32, #tpu.memory_space<vmem>>, vector<1x128xf32>
    %4 = vector.broadcast %3 : vector<1x128xf32> to vector<16x128xf32>
    %5 = arith.addf %2, %4 : vector<16x128xf32>
    %cst_5 = arith.constant 0.000000e+00 : f32
    %6 = vector.broadcast %cst_5 : f32 to vector<16x128xf32>
    %7 = arith.maximumf %5, %6 : vector<16x128xf32>
    %8 = arith.truncf %7 : vector<16x128xf32> to vector<16x128xbf16>
    %c0_6 = arith.constant 0 : index
    %c0_7 = arith.constant 0 : index
    %9 = vector.load %arg4[%c0_6, %c0_7] : memref<128x128xbf16, #tpu.memory_space<vmem>>, vector<128x128xbf16>
    %cst_8 = arith.constant dense<0.000000e+00> : vector<16x128xf32>
    %10 = tpu.matmul %8, %9, %cst_8 {dimension_numbers = #tpu.dot_dimension_numbers<[1], [0], [0], [1], [0, 0, 1, 1], [], []>} : vector<16x128xbf16>, vector<128x128xbf16>, vector<16x128xf32> -> vector<16x128xf32>
    %c0_9 = arith.constant 0 : index
    %c0_10 = arith.constant 0 : index
    %11 = vector.load %arg5[%c0_9, %c0_10] : memref<1x128xf32, #tpu.memory_space<vmem>>, vector<1x128xf32>
    %12 = vector.broadcast %11 : vector<1x128xf32> to vector<16x128xf32>
    %13 = arith.addf %10, %12 : vector<16x128xf32>
    %cst_11 = arith.constant 0.000000e+00 : f32
    %14 = vector.broadcast %cst_11 : f32 to vector<16x128xf32>
    %15 = arith.maximumf %13, %14 : vector<16x128xf32>
    %16 = arith.truncf %15 : vector<16x128xf32> to vector<16x128xbf16>
    %c0_12 = arith.constant 0 : index
    %c0_13 = arith.constant 0 : index
    %17 = vector.load %arg6[%c0_12, %c0_13] : memref<128x128xbf16, #tpu.memory_space<vmem>>, vector<128x128xbf16>
    %cst_14 = arith.constant dense<0.000000e+00> : vector<16x128xf32>
    %18 = tpu.matmul %16, %17, %cst_14 {dimension_numbers = #tpu.dot_dimension_numbers<[1], [0], [0], [1], [0, 0, 1, 1], [], []>} : vector<16x128xbf16>, vector<128x128xbf16>, vector<16x128xf32> -> vector<16x128xf32>
    %c0_15 = arith.constant 0 : index
    %c0_16 = arith.constant 0 : index
    %19 = vector.load %arg7[%c0_15, %c0_16] : memref<1x128xf32, #tpu.memory_space<vmem>>, vector<1x128xf32>
    %20 = vector.broadcast %19 : vector<1x128xf32> to vector<16x128xf32>
    %21 = arith.addf %18, %20 : vector<16x128xf32>
    %22 = arith.truncf %21 : vector<16x128xf32> to vector<16x128xbf16>
    %c0_17 = arith.constant 0 : index
    %c0_18 = arith.constant 0 : index
    %23 = vector.load %arg8[%c0_17, %c0_18] : memref<16x128xbf16, #tpu.memory_space<vmem>>, vector<16x128xbf16>
    tpu.vector_store %arg8[%c0_17, %c0_18], %22 {strides = array<i32>} : memref<16x128xbf16, #tpu.memory_space<vmem>>, vector<16x128xbf16>,
    return
  }
  func.func @transform_0(%arg0: i32) -> (i32, i32) {
    %c0_i32 = arith.constant 0 : i32
    %c0_i32_0 = arith.constant 0 : i32
    return %arg0, %c0_i32 : i32, i32
  }
  func.func @transform_1(%arg0: i32) -> (i32, i32) {
    %c0_i32 = arith.constant 0 : i32
    %c0_i32_0 = arith.constant 0 : i32
    %c0_i32_1 = arith.constant 0 : i32
    return %c0_i32, %c0_i32_0 : i32, i32
  }
  func.func @transform_2(%arg0: i32) -> (i32, i32) {
    %c0_i32 = arith.constant 0 : i32
    %c0_i32_0 = arith.constant 0 : i32
    %c0_i32_1 = arith.constant 0 : i32
    return %c0_i32, %c0_i32_0 : i32, i32
  }
  func.func @transform_3(%arg0: i32) -> (i32, i32) {
    %c0_i32 = arith.constant 0 : i32
    %c0_i32_0 = arith.constant 0 : i32
    %c0_i32_1 = arith.constant 0 : i32
    return %c0_i32, %c0_i32_0 : i32, i32
  }
  func.func @transform_4(%arg0: i32) -> (i32, i32) {
    %c0_i32 = arith.constant 0 : i32
    %c0_i32_0 = arith.constant 0 : i32
    %c0_i32_1 = arith.constant 0 : i32
    return %c0_i32, %c0_i32_0 : i32, i32
  }
  func.func @transform_5(%arg0: i32) -> (i32, i32) {
    %c0_i32 = arith.constant 0 : i32
    %c0_i32_0 = arith.constant 0 : i32
    %c0_i32_1 = arith.constant 0 : i32
    return %c0_i32, %c0_i32_0 : i32, i32
  }
  func.func @transform_6(%arg0: i32) -> (i32, i32) {
    %c0_i32 = arith.constant 0 : i32
    %c0_i32_0 = arith.constant 0 : i32
    %c0_i32_1 = arith.constant 0 : i32
    return %c0_i32, %c0_i32_0 : i32, i32
  }
  func.func @transform_7(%arg0: i32) -> (i32, i32) {
    %c0_i32 = arith.constant 0 : i32
    %c0_i32_0 = arith.constant 0 : i32
    return %arg0, %c0_i32 : i32, i32
  }
}

</mosaic_0001>

<bundles_post_ra>
// kernel: tpu_custom_call.1
= control target key start
LH: loop header
LB: loop body
LE: loop exit
PB: predicated region body
PF: predicated region fallthrough
CT: control target
= control target key end

     0   :  { %12 = vsyncpa [#allocation3], 0  ;;  %s696_s0 = inlined_call_operand.hbm [shape: bf16[2,8], index: 0, kind: input, shape index: {}]   ;;  %s697_s1 = inlined_call_operand.hbm [shape: bf16[8,128], index: 1, kind: input, shape index: {}]   ;;  %s698_s2 = inlined_call_operand.vmem [shape: f32[1,128], index: 2, kind: input, shape index: {}]   ;;  %s699_s3 = inlined_call_operand.hbm [shape: bf16[128,128], index: 3, kind: input, shape index: {}]   ;;  %s700_s4 = inlined_call_operand.vmem [shape: f32[1,128], index: 4, kind: input, shape index: {}]   ;;  %s701_s5 = inlined_call_operand.hbm [shape: bf16[128,128], index: 5, kind: input, shape index: {}]   ;;  %s702_s6 = inlined_call_operand.vmem [shape: f32[1,128], index: 6, kind: input, shape index: {}]   ;;  %s703_s7 = inlined_call_operand.hbm [shape: bf16[2,128], index: 7, kind: output, shape index: {}]  }
   0x1   :  { %13 = vsyncpa [#allocation6], 0 }
   0x2   :  { %14 = vsyncpa [#allocation9], 0 }
   0x3   :  { %15 = vsyncpa [#allocation4], 0  ;;  %s34_s26 = sshll.u32 %s697_s1, 4  ;;  %s35_s26 = int_to_ptr.hbm [resolvable:$true] %s34_s26 }
   0x4   :  { %19 = vsyncadd [#allocation3], 112  ;;  %s609_s27 = smov [#allocation5]   ;;  %s20_s8 = sshll.u32 %s696_s0, 4  ;;  %s21_s8 = int_to_ptr.hbm [resolvable:$true] %s20_s8 }
   0x5   :  { %s36_s28 = sshll.u32 %s609_s27, 4  ;;  %s610_s9 = smov [#allocation2]   ;;  %s37_s28 = int_to_ptr.vmem [resolvable:$true] %s36_s28 }
   0x6   :  { %39 = dma.hbm_to_vmem [thread:$0]  %s35_s26, 64, %s37_s28, [#allocation6]  }
   0x7   :  { %s22_s10 = sshll.u32 %s610_s9, 4  ;;  %s611_s11 = smov 16   ;;  %s23_s10 = int_to_ptr.vmem [resolvable:$true] %s22_s10 }
   0x8   :  { %s612_s12 = smov 1   ;;  %s46_s14 = sshll.u32 %s699_s3, 4  ;;  %s47_s14 = int_to_ptr.hbm [resolvable:$true] %s46_s14 }
   0x9   :  { %28 = dma.hbm_to_vmem [thread:$0]  %s21_s8, 16, %s23_s10, [#allocation3], %s611_s11, %s611_s11, %s612_s12  }
   0xa   :  { %s613_s15 = smov [#allocation7]   ;;  %s61_s18 = sshll.u32 %s701_s5, 4  ;;  %s62_s18 = int_to_ptr.hbm [resolvable:$true] %s61_s18 }
   0xb   :  { %s48_s16 = sshll.u32 %s613_s15, 4  ;;  %s614_s19 = smov 64   ;;  %s49_s16 = int_to_ptr.vmem [resolvable:$true] %s48_s16 }
   0xc   :  { %s615_s20 = smov 4   ;;  %s616_s21 = smov [#allocation8]  }
   0xd   :  { %54 = dma.hbm_to_vmem [thread:$0]  %s47_s14, 1024, %s49_s16, [#allocation6], %s614_s19, %s614_s19, %s615_s20  }
   0xe   :  { %s63_s22 = sshll.u32 %s616_s21, 4  ;;  %s64_s22 = int_to_ptr.vmem [resolvable:$true] %s63_s22 }
   0xf   :  { %69 = dma.hbm_to_vmem [thread:$0]  %s62_s18, 1024, %s64_s22, [#allocation9], %s614_s19, %s614_s19, %s615_s20  }
  0x10   :  { %601 = dma.done.wait [#allocation3], 128  }
  0x11   :  { %602 = vsyncadd [#allocation3], 4294967168 }
  0x12   :  { %603 = dma.done.wait [#allocation6], 1088  }
  0x13   :  { %604 = vsyncadd [#allocation6], 4294966208 }
  0x14   :  { %605 = dma.done.wait [#allocation9], 1024  }
  0x15   :  { %606 = vsyncadd [#allocation9], 4294966272  ;;  %vm129_vm0 = vcmask 1043456   ;;  %v97_v0 = vld [vmem:[#allocation5] sm:$0xf]  ;;  %v459_v7 = vld [vmem:[#allocation7 + $0x30] sm:$0xff] }
  0x16   :  { %v89_v1 = vld [vmem:[#allocation2] sm:$0x1]  ;;  %v131_v2 = vsel %vm129_vm0, %v97_v0, 0  ;;  %v90_v3 = vld [vmem:[#allocation2 + $0x1] sm:$0x1]  ;;  %v460_v4 = vld [vmem:[#allocation7 + $0x38] sm:$0xff] }
  0x17   :  { %140 = vmatpush.bf16.msra.mxu0 %v131_v2  ;;  %v91_v5 = vld [vmem:[#allocation2 + $0x2] sm:$0x1]  ;;  %v92_v6 = vld [vmem:[#allocation2 + $0x3] sm:$0x1]  ;;  %103 = vst [vmem:[#allocation1] ss:$9 sm:$0xff] %v89_v1  ;;  %218 = vmatpush.bf16.msra.mxu1 %v460_v4 }
  0x18   :  { %v93_v8 = vld [vmem:[#allocation2 + $0x4] sm:$0x1]  ;;  %106 = vst [vmem:[#allocation1 + $0x1] ss:$9 sm:$0xff] %v90_v3  ;;  %v94_v9 = vld [vmem:[#allocation2 + $0x5] sm:$0x1] }
  0x19   :  { %109 = vst [vmem:[#allocation1 + $0x2] ss:$9 sm:$0xff] %v91_v5  ;;  %v95_v10 = vld [vmem:[#allocation2 + $0x6] sm:$0x1]  ;;  %v96_v11 = vld [vmem:[#allocation2 + $0x7] sm:$0x1] }
  0x1a   :  { %112 = vst [vmem:[#allocation1 + $0x3] ss:$9 sm:$0xff] %v92_v6  ;;  %v458_v12 = vld [vmem:[#allocation7 + $0x28] sm:$0xff]  ;;  %v457_v13 = vld [vmem:[#allocation7 + $0x20] sm:$0xff]  ;;  %vm126_vm1 = vcmask 64512   ;;  %v456_v15 = vld [vmem:[#allocation7 + $0x18] sm:$0xff] }
  0x1b   :  { %115 = vst [vmem:[#allocation1 + $0x4] ss:$9 sm:$0xff] %v93_v8  ;;  %219 = vmatpush.bf16.msra.mxu1 %v459_v7  ;;  %v455_v16 = vld [vmem:[#allocation7 + $0x10] sm:$0xff]  ;;  %v454_v17 = vld [vmem:[#allocation7 + $0x8] sm:$0xff]  ;;  %v453_v18 = vld [vmem:[#allocation7] sm:$0xff]  ;;  %vm323_vm2 = vcmask 1040384  }
  0x1c   :  { %118 = vst [vmem:[#allocation1 + $0x5] ss:$9 sm:$0xff] %v94_v9  ;;  %v468_v19 = vld [vmem:[#allocation8 + $0x38] sm:$0xff]  ;;  %v467_v20 = vld [vmem:[#allocation8 + $0x30] sm:$0xff]  ;;  %v466_v21 = vld [vmem:[#allocation8 + $0x28] sm:$0xff]  ;;  %vm327_vm3 = vcmask 1041409  }
  0x1d   :  { %121 = vst [vmem:[#allocation1 + $0x6] ss:$9 sm:$0xff] %v95_v10  ;;  %303 = vmatpush.bf16.msra.mxu2 %v468_v19  ;;  %v465_v22 = vld [vmem:[#allocation8 + $0x20] sm:$0xff]  ;;  %v478_v24 = vld [vmem:[%s698_s2] ss:$0 sm:$0xff]  ;;  %v464_v31 = vld [vmem:[#allocation8 + $0x18] sm:$0xff] }
  0x1e   :  { %124 = vst [vmem:[#allocation1 + $0x7] ss:$9 sm:$0xff] %v96_v11  ;;  %v463_v32 = vld [vmem:[#allocation8 + $0x10] sm:$0xff]  ;;  %v462_v33 = vld [vmem:[#allocation8 + $0x8] sm:$0xff]  ;;  %v461_v34 = vld [vmem:[#allocation8] sm:$0xff]  ;;  %vm331_vm4 = vcmask 1042434  }
  0x1f   :  { %220 = vmatpush.bf16.msra.mxu1 %v458_v12  ;;  %v479_v36 = vld [vmem:[%s700_s4] ss:$0 sm:$0xff]  ;;  %vm335_vm5 = vcmask 1043459  }
  0x20   :  { %v480_v43 = vld [vmem:[%s702_s6] ss:$0 sm:$0xff] }
  0x21   :  { %304 = vmatpush.bf16.msra.mxu2 %v467_v20 }
  0x23   :  { %221 = vmatpush.bf16.msra.mxu1 %v457_v13 }
  0x25   :  { %v125_v14 = vld [vmem:[#allocation1] sm:$0xff]  ;;  %305 = vmatpush.bf16.msra.mxu2 %v466_v21 }
  0x26   :  { %388 = vmatmul.msk.bf16.vlgmr.msra.gmra.mxu0 %vm126_vm1, %v125_v14 }
  0x27   :  { %222 = vmatpush.bf16.msra.mxu1 %v456_v15 }
  0x29   :  { %306 = vmatpush.bf16.msra.mxu2 %v465_v22 }
  0x2b   :  { %223 = vmatpush.bf16.msra.mxu1 %v455_v16 }
  0x2d   :  { %307 = vmatpush.bf16.msra.mxu2 %v464_v31 }
  0x2f   :  { %224 = vmatpush.bf16.msra.mxu1 %v454_v17 }
  0x31   :  { %308 = vmatpush.bf16.msra.mxu2 %v463_v32 }
  0x33   :  { %225 = vmatpush.bf16.msra.mxu1 %v453_v18 }
  0x35   :  { %309 = vmatpush.bf16.msra.mxu2 %v462_v33 }
  0x39   :  { %310 = vmatpush.bf16.msra.mxu2 %v461_v34 }
  0xa3   :  { %v142_v23 = vpop.f32.mrf.mxu0 }
  0xa4   :  { %v143_v25 = vadd.f32 %v478_v24, %v142_v23 }
  0xa6   :  { %v147_v28 = vmax.f32 %v143_v25, 0.0 }
  0xab   :  { %v144_v26 = vpop.f32.mrf.mxu0 }
  0xac   :  { %v145_v27 = vadd.f32 %v478_v24, %v144_v26 }
  0xae   :  { %v148_v29 = vmax.f32 %v145_v27, 0.0 }
  0xb0   :  { %v149_v30 = vpack.c.bf16 %v148_v29, %v147_v28 }
  0xb2   :  { %226 = vmatmul.bf16.vlgmr.msra.gmra.mxu1 %v149_v30 }
 0x12f   :  { %v227_v35 = vpop.f32.mrf.mxu1 }
 0x130   :  { %v228_v37 = vadd.f32 %v479_v36, %v227_v35 }
 0x132   :  { %v232_v40 = vmax.f32 %v228_v37, 0.0 }
 0x137   :  { %v229_v38 = vpop.f32.mrf.mxu1 }
 0x138   :  { %v230_v39 = vadd.f32 %v479_v36, %v229_v38 }
 0x13a   :  { %v233_v41 = vmax.f32 %v230_v39, 0.0 }
 0x13c   :  { %v234_v42 = vpack.c.bf16 %v233_v41, %v232_v40 }
 0x13e   :  { %311 = vmatmul.bf16.vlgmr.msra.gmra.mxu2 %v234_v42 }
 0x1c1   :  { %v312_v44 = vpop.f32.mrf.mxu2 }
 0x1c2   :  { %v313_v45 = vadd.f32 %v480_v43, %v312_v44 }
 0x1c4   :  { %v317_v46 = vpack.c.bf16 %v313_v45, %v313_v45 }
 0x1c6   :  { %v321_v47 = vrot.slane %v317_v46, 3 }
 0x1c8   :  { %v326_v48 = vsel %vm323_vm2, %v317_v46, %v321_v47  ;;  %v328_v49 = vsel %vm327_vm3, %v317_v46, %v321_v47  ;;  %v332_v50 = vsel %vm331_vm4, %v317_v46, %v321_v47  ;;  %v336_v51 = vsel %vm335_vm5, %v317_v46, %v321_v47 }
 0x1c9   :  { %v330_v52 = vrot.slane %v328_v49, 1  ;;  %v334_v53 = vrot.slane %v332_v50, 2  ;;  %v338_v54 = vrot.slane %v336_v51, 3  ;;  %359 = vst [vmem:[#allocation10] sm:$0x1] %v326_v48  ;;  %v314_v55 = vpop.f32.mrf.mxu2 }
 0x1ca   :  { %v315_v56 = vadd.f32 %v480_v43, %v314_v55 }
 0x1cb   :  { %360 = vst [vmem:[#allocation10 + $0x1] sm:$0x1] %v330_v52 }
 0x1cc   :  { %361 = vst [vmem:[#allocation10 + $0x2] sm:$0x1] %v334_v53  ;;  %v318_v57 = vpack.c.bf16 %v315_v56, %v315_v56 }
 0x1cd   :  { %362 = vst [vmem:[#allocation10 + $0x3] sm:$0x1] %v338_v54 }
 0x1ce   :  { %v322_v58 = vrot.slane %v318_v57, 3 }
 0x1d0   :  { %v341_v59 = vsel %vm323_vm2, %v318_v57, %v322_v58  ;;  %v342_v60 = vsel %vm327_vm3, %v318_v57, %v322_v58  ;;  %v345_v61 = vsel %vm331_vm4, %v318_v57, %v322_v58  ;;  %v348_v62 = vsel %vm335_vm5, %v318_v57, %v322_v58 }
 0x1d1   :  { %v344_v63 = vrot.slane %v342_v60, 1  ;;  %v347_v0 = vrot.slane %v345_v61, 2  ;;  %v350_v1 = vrot.slane %v348_v62, 3  ;;  %363 = vst [vmem:[#allocation10 + $0x4] sm:$0x1] %v341_v59 }
 0x1d3   :  { %364 = vst [vmem:[#allocation10 + $0x5] sm:$0x1] %v344_v63 }
 0x1d4   :  { %365 = vst [vmem:[#allocation10 + $0x6] sm:$0x1] %v347_v0 }
 0x1d5   :  { %366 = vst [vmem:[#allocation10 + $0x7] sm:$0x1] %v350_v1 }
 0x1d6   :  { %370 = vsyncadd [#allocation4], 112  ;;  %s373_s26 = sshll.u32 %s703_s7, 4  ;;  %s617_s27 = smov [#allocation10]   ;;  %s374_s26 = int_to_ptr.hbm [resolvable:$true] %s373_s26 }
 0x1d7   :  { %s371_s28 = sshll.u32 %s617_s27, 4  ;;  %s372_s28 = int_to_ptr.vmem [resolvable:$true] %s371_s28 }
 0x1d8   :  { %379 = dma.vmem_to_hbm [thread:$0]  %s372_s28, 16, %s374_s26, [#allocation4], %s611_s11, %s611_s11, %s612_s12  }
 0x1d9   :  { %607 = dma.done.wait [#allocation4], 128  }
 0x1da   :  { %608 = vsyncadd [#allocation4], 4294967168 }
 0x1db   :  { %384 = vsyncpa [#allocation3], 1 }
 0x1dc   :  { %385 = vsyncpa [#allocation6], 1 }
 0x1dd   :  { %386 = vsyncpa [#allocation9], 1 }
 0x1de   :  { %387 = vsyncpa [#allocation4], 1 }

</bundles_post_ra>
